<compile_context>
chip_gen: v7x
topology: tpu7x:2x2x1
jax: 0.10.0
libtpu: 0.0.40
codegen_flags: <defaults>
</compile_context>

<pallas_src>
import functools

import jax
import jax.numpy as jnp
from jax.experimental import pallas as pl
from jax.experimental.pallas import tpu as pltpu

HIDDEN = 30  # fixed by the PyTorch module (nn.Linear(input_size, 30))


def _drivemind_kernel(xt_ref, w1_ref, b1_ref, w2t_ref, b2_ref, ot_ref, *, sub):
    # Transposed layout: batch lives on the lane (last) axis.
    #   xt : [D_in, TB]   w1 : [H, D_in]   b1 : [H, 1]
    #   w2t: [H, A]       b2 : [A, 1]      ot : [A, TB]
    w1 = w1_ref[...]
    b1 = b1_ref[...]
    w2t = w2t_ref[...]
    b2 = b2_ref[...]

    d_in = xt_ref.shape[0]
    n_act = w2t.shape[1]
    tb = xt_ref.shape[1]
    n_sub = tb // sub

    # Hoisted weight-column slices (re-used by every sub-chunk).
    # TODO(synk): pre-replicate these columns across the 128-lane axis in
    # prepare_params to drop the per-mul lane-broadcast (few-% win).
    w1_cols = [w1[:, k:k + 1] for k in range(d_in)]      # each [H, 1]
    w2_cols = [w2t[:, a:a + 1] for a in range(n_act)]    # each [H, 1]

    # Static Python loop over lane sub-chunks: keeps the accumulation chain in
    # vregs instead of re-materializing a full [H, TB] VMEM temporary per MAC
    # term. Slices are static => zero-cost ref views.
    for c in range(n_sub):
        lo = c * sub
        x = xt_ref[:, lo:lo + sub]                       # [D_in, SUB]

        # Layer 1: h = relu(W1 @ x + b1) as unrolled VPU broadcast-MACs (K=5).
        h = b1 + w1_cols[0] * x[0:1, :]
        for k in range(1, d_in):
            h = h + w1_cols[k] * x[k:k + 1, :]
        h = jnp.maximum(h, 0.0)                          # [H, SUB]

        # Layer 2: q[a] = sum_j w2[a,j] * h[j]  -- per-action elementwise mul
        # ([H,SUB] VPU) + cross-sublane reduce (XLU slot, otherwise idle),
        # accumulated in f32 (keeps the bf16 path numerically tight).
        rows = []
        for a in range(n_act):
            tmp = h * w2_cols[a]                         # [H, SUB]
            rows.append(jnp.sum(tmp.astype(jnp.float32), axis=0, keepdims=True))
        q = jnp.concatenate(rows, axis=0) + b2.astype(jnp.float32)   # [A, SUB]
        q = jnp.maximum(q, 0.0)   # final ReLU -- matches the PyTorch forward()

        ot_ref[:, lo:lo + sub] = q.astype(ot_ref.dtype)


def _pick_batch_tile(batch, max_tb=16384):
    """Lane-axis batch tile: a multiple of 128 that divides `batch`, capped at
    max_tb, and (when batch allows) small enough that the grid has >= 2 steps
    so the "parallel" batch axis can be split across v7x's two TensorCores.
    Small / non-128-multiple batches fall back to a single full-extent block."""
    if batch < 256 or batch % 128 != 0:
        return batch
    tb = min(max_tb, (batch // 2 // 128) * 128)
    tb = max(tb, 128)
    while batch % tb != 0:
        tb -= 128
    return tb


def _pick_sub_chunk(tb):
    """In-kernel lane sub-chunk: keeps per-chunk intermediates (~[32,256] f32 =
    8 vregs) register-resident."""
    for sub in (256, 128):
        if tb % sub == 0:
            return sub
    return tb


def prepare_params(w1, b1, w2, b2, dtype=jnp.float32):
    """One-time (hoisted) parameter prep.

    PyTorch's nn.Linear stores weights [out, in]; that is already the layout
    layer 1 wants. Layer 2's weight is pre-transposed to [HIDDEN, A] so each
    action column can be sliced directly (lane-broadcast against h), biases are
    reshaped to [out, 1], and everything is cast to the compute dtype (use
    jnp.bfloat16 on v6e/v7x for 2x VPU throughput + half the HBM traffic;
    keep float32 on v5e, whose VPU has no bf16)."""
    return (w1.astype(dtype),
            b1.reshape(-1, 1).astype(dtype),
            w2.T.astype(dtype),
            b2.reshape(-1, 1).astype(dtype))


def drivemind_forward_t(xt, params, *, max_batch_tile=16384):
    """Preferred entry point: xt is [D_in, B] (batch already on the lane axis);
    returns q^T with shape [A, B]. No wrapper-side transposes -- store replay
    states in this layout upstream and consume [A, B] directly."""
    w1, b1_2d, w2t, b2_2d = params
    d_in, batch = xt.shape
    hidden = w1.shape[0]
    n_act = w2t.shape[1]

    tb = _pick_batch_tile(batch, max_batch_tile)
    sub = _pick_sub_chunk(tb)
    grid = (batch // tb,)

    itemsize = jnp.dtype(xt.dtype).itemsize
    cost = pl.CostEstimate(
        flops=2 * batch * (d_in * hidden + hidden * n_act),
        transcendentals=0,
        bytes_accessed=(d_in * batch + n_act * batch) * itemsize
        + (w1.size + b1_2d.size + w2t.size + b2_2d.size) * itemsize,
    )

    # Double-buffered x ([d_in,tb]) + out ([n_act,tb]) tiles; sublane dims pad
    # to 8. Only set an explicit VMEM limit if a huge tile would exceed the
    # scoped default (v5e: 16 MiB).
    vmem_est = (2 * 8 * tb + 2 * 8 * tb) * itemsize + (1 << 20)
    vmem_limit = int(2 * vmem_est) if vmem_est > (12 << 20) else None

    full = lambda i: (0, 0)  # weights/biases stay VMEM-resident across the grid
    kernel = functools.partial(_drivemind_kernel, sub=sub)

    return pl.pallas_call(
        kernel,
        out_shape=jax.ShapeDtypeStruct((n_act, batch), xt.dtype),
        grid=grid,
        in_specs=[
            pl.BlockSpec((d_in, tb), lambda i: (0, i)),   # x tile, pipelined over batch
            pl.BlockSpec((hidden, d_in), full),           # w1
            pl.BlockSpec((hidden, 1), full),              # b1
            pl.BlockSpec((hidden, n_act), full),          # w2^T
            pl.BlockSpec((n_act, 1), full),               # b2
        ],
        out_specs=pl.BlockSpec((n_act, tb), lambda i: (0, i)),  # lane-dense output tile
        compiler_params=pltpu.CompilerParams(
            dimension_semantics=("parallel",),            # batch axis: megacore-shardable
            vmem_limit_bytes=vmem_limit,
        ),
        cost_estimate=cost,
    )(xt, w1, b1_2d, w2t, b2_2d)
    # TODO(synk): optionally fuse the per-sample argmax over actions into the
    # kernel (emit [1, B]) for the env-step path.


def drivemind_forward(x, params, *, max_batch_tile=16384):
    """Convenience wrapper for [B, D_in] inputs -> [B, A]. NOTE: the two
    transposes here are separate XLA HBM passes over skinny arrays; prefer
    drivemind_forward_t for hot paths."""
    return drivemind_forward_t(x.T, params, max_batch_tile=max_batch_tile).T


def init_params(key, input_size, poss_actions):
    # Deterministic init mimicking nn.Linear's U(-1/sqrt(fan_in), 1/sqrt(fan_in)).
    k1, k2, k3, k4 = jax.random.split(key, 4)
    lim1 = 1.0 / jnp.sqrt(jnp.float32(input_size))
    lim2 = 1.0 / jnp.sqrt(jnp.float32(HIDDEN))
    w1 = jax.random.uniform(k1, (HIDDEN, input_size), jnp.float32, -lim1, lim1)
    b1 = jax.random.uniform(k2, (HIDDEN,), jnp.float32, -lim1, lim1)
    w2 = jax.random.uniform(k3, (poss_actions, HIDDEN), jnp.float32, -lim2, lim2)
    b2 = jax.random.uniform(k4, (poss_actions,), jnp.float32, -lim2, lim2)
    return w1, b1, w2, b2


def _reference(x, w1, b1, w2, b2):
    h = jnp.maximum(x @ w1.T + b1, 0.0)
    return jnp.maximum(h @ w2.T + b2, 0.0)


if __name__ == "__main__":
    input_size, poss_actions = 5, 3        # 5 sensors -> 3 actions (self-driving agent)

    key = jax.random.PRNGKey(0)
    k_x1, k_x2, k_p = jax.random.split(key, 3)
    w1, b1, w2, b2 = init_params(k_p, input_size, poss_actions)

    params_f32 = prepare_params(w1, b1, w2, b2)          # hoisted, done once
    fwd_t = jax.jit(drivemind_forward_t, static_argnames=("max_batch_tile",))
    fwd = jax.jit(drivemind_forward, static_argnames=("max_batch_tile",))

    # Case 1: batched replay-style forward in the preferred transposed layout.
    # batch=1024 -> tb=512, grid=(2,) (>=2 steps for v7x megacore), sub=256.
    x_big = jax.random.normal(k_x1, (1024, input_size), dtype=jnp.float32)
    qt_big = fwd_t(x_big.T, params_f32)
    jax.block_until_ready(qt_big)
    assert qt_big.shape == (poss_actions, 1024)
    ref_big = _reference(x_big, w1, b1, w2, b2)
    assert jnp.allclose(qt_big.T, ref_big, atol=1e-5, rtol=1e-5)

    # Case 2: tiny per-env-step forward (single full-block fallback path),
    # via the [B, D_in] convenience wrapper.
    x_small = jax.random.normal(k_x2, (2, input_size), dtype=jnp.float32)
    q_small = fwd(x_small, params_f32)
    jax.block_until_ready(q_small)
    assert q_small.shape == (2, poss_actions)
    assert jnp.allclose(q_small, _reference(x_small, w1, b1, w2, b2),
                        atol=1e-5, rtol=1e-5)

    # Case 3: bf16 path (v6e/v7x: native bf16 VPU + half the HBM traffic; keep
    # f32 on v5e). Layer-2 accumulates in f32; tolerance loosened for bf16
    # inputs/weights/intermediates.
    params_bf16 = prepare_params(w1, b1, w2, b2, dtype=jnp.bfloat16)
    qt_bf16 = fwd_t(x_big.T.astype(jnp.bfloat16), params_bf16)
    jax.block_until_ready(qt_bf16)
    assert qt_bf16.shape == (poss_actions, 1024)
    assert jnp.allclose(qt_bf16.T.astype(jnp.float32), ref_big, atol=1e-1, rtol=1e-1)

    print("KERNEL_OK")
</pallas_src>

<mosaic_0001>
module attributes {stable_mosaic.version = 11 : i64} {
  func.func @_drivemind_kernel(%arg0: i32, %arg1: memref<5x512xf32, #tpu.memory_space<vmem>>, %arg2: memref<30x5xf32, #tpu.memory_space<vmem>>, %arg3: memref<30x1xf32, #tpu.memory_space<vmem>>, %arg4: memref<30x3xf32, #tpu.memory_space<vmem>>, %arg5: memref<3x1xf32, #tpu.memory_space<vmem>>, %arg6: memref<3x512xf32, #tpu.memory_space<vmem>>) attributes {dimension_semantics = [#tpu.dimension_semantics<parallel>], iteration_bounds = array<i64: 2>, scalar_prefetch = 0 : i64, scratch_operands = 0 : i64, tpu.core_type = #tpu.core_type<tc>, window_params = [{transform_indices = @transform_0, window_bounds = array<i64: 5, 512>}, {pipeline_mode = #tpu.pipeline_mode<synchronous>, transform_indices = @transform_1, window_bounds = array<i64: 30, 5>}, {pipeline_mode = #tpu.pipeline_mode<synchronous>, transform_indices = @transform_2, window_bounds = array<i64: 30, 1>}, {pipeline_mode = #tpu.pipeline_mode<synchronous>, transform_indices = @transform_3, window_bounds = array<i64: 30, 3>}, {pipeline_mode = #tpu.pipeline_mode<synchronous>, transform_indices = @transform_4, window_bounds = array<i64: 3, 1>}, {transform_indices = @transform_5, window_bounds = array<i64: 3, 512>}]} {
    %c0 = arith.constant 0 : index
    %c0_0 = arith.constant 0 : index
    %0 = vector.load %arg2[%c0, %c0_0] : memref<30x5xf32, #tpu.memory_space<vmem>>, vector<30x5xf32>
    %c0_1 = arith.constant 0 : index
    %c0_2 = arith.constant 0 : index
    %1 = vector.load %arg3[%c0_1, %c0_2] : memref<30x1xf32, #tpu.memory_space<vmem>>, vector<30x1xf32>
    %c0_3 = arith.constant 0 : index
    %c0_4 = arith.constant 0 : index
    %2 = vector.load %arg4[%c0_3, %c0_4] : memref<30x3xf32, #tpu.memory_space<vmem>>, vector<30x3xf32>
    %c0_5 = arith.constant 0 : index
    %c0_6 = arith.constant 0 : index
    %3 = vector.load %arg5[%c0_5, %c0_6] : memref<3x1xf32, #tpu.memory_space<vmem>>, vector<3x1xf32>
    %4 = vector.extract_strided_slice %0 {offsets = [0, 0], sizes = [30, 1], strides = [1, 1]} : vector<30x5xf32> to vector<30x1xf32>
    %5 = vector.extract_strided_slice %0 {offsets = [0, 1], sizes = [30, 1], strides = [1, 1]} : vector<30x5xf32> to vector<30x1xf32>
    %6 = vector.extract_strided_slice %0 {offsets = [0, 2], sizes = [30, 1], strides = [1, 1]} : vector<30x5xf32> to vector<30x1xf32>
    %7 = vector.extract_strided_slice %0 {offsets = [0, 3], sizes = [30, 1], strides = [1, 1]} : vector<30x5xf32> to vector<30x1xf32>
    %8 = vector.extract_strided_slice %0 {offsets = [0, 4], sizes = [30, 1], strides = [1, 1]} : vector<30x5xf32> to vector<30x1xf32>
    %9 = vector.extract_strided_slice %2 {offsets = [0, 0], sizes = [30, 1], strides = [1, 1]} : vector<30x3xf32> to vector<30x1xf32>
    %10 = vector.extract_strided_slice %2 {offsets = [0, 1], sizes = [30, 1], strides = [1, 1]} : vector<30x3xf32> to vector<30x1xf32>
    %11 = vector.extract_strided_slice %2 {offsets = [0, 2], sizes = [30, 1], strides = [1, 1]} : vector<30x3xf32> to vector<30x1xf32>
    %c0_7 = arith.constant 0 : index
    %c0_8 = arith.constant 0 : index
    %12 = vector.load %arg1[%c0_7, %c0_8] : memref<5x512xf32, #tpu.memory_space<vmem>>, vector<5x256xf32>
    %13 = vector.extract_strided_slice %12 {offsets = [0, 0], sizes = [1, 256], strides = [1, 1]} : vector<5x256xf32> to vector<1x256xf32>
    %14 = vector.broadcast %4 : vector<30x1xf32> to vector<30x256xf32>
    %15 = vector.broadcast %13 : vector<1x256xf32> to vector<30x256xf32>
    %16 = arith.mulf %14, %15 : vector<30x256xf32>
    %17 = vector.broadcast %1 : vector<30x1xf32> to vector<30x256xf32>
    %18 = arith.addf %17, %16 : vector<30x256xf32>
    %19 = vector.extract_strided_slice %12 {offsets = [1, 0], sizes = [1, 256], strides = [1, 1]} : vector<5x256xf32> to vector<1x256xf32>
    %20 = vector.broadcast %5 : vector<30x1xf32> to vector<30x256xf32>
    %21 = vector.broadcast %19 : vector<1x256xf32> to vector<30x256xf32>
    %22 = arith.mulf %20, %21 : vector<30x256xf32>
    %23 = arith.addf %18, %22 : vector<30x256xf32>
    %24 = vector.extract_strided_slice %12 {offsets = [2, 0], sizes = [1, 256], strides = [1, 1]} : vector<5x256xf32> to vector<1x256xf32>
    %25 = vector.broadcast %6 : vector<30x1xf32> to vector<30x256xf32>
    %26 = vector.broadcast %24 : vector<1x256xf32> to vector<30x256xf32>
    %27 = arith.mulf %25, %26 : vector<30x256xf32>
    %28 = arith.addf %23, %27 : vector<30x256xf32>
    %29 = vector.extract_strided_slice %12 {offsets = [3, 0], sizes = [1, 256], strides = [1, 1]} : vector<5x256xf32> to vector<1x256xf32>
    %30 = vector.broadcast %7 : vector<30x1xf32> to vector<30x256xf32>
    %31 = vector.broadcast %29 : vector<1x256xf32> to vector<30x256xf32>
    %32 = arith.mulf %30, %31 : vector<30x256xf32>
    %33 = arith.addf %28, %32 : vector<30x256xf32>
    %34 = vector.extract_strided_slice %12 {offsets = [4, 0], sizes = [1, 256], strides = [1, 1]} : vector<5x256xf32> to vector<1x256xf32>
    %35 = vector.broadcast %8 : vector<30x1xf32> to vector<30x256xf32>
    %36 = vector.broadcast %34 : vector<1x256xf32> to vector<30x256xf32>
    %37 = arith.mulf %35, %36 : vector<30x256xf32>
    %38 = arith.addf %33, %37 : vector<30x256xf32>
    %cst = arith.constant 0.000000e+00 : f32
    %39 = vector.broadcast %cst : f32 to vector<30x256xf32>
    %40 = arith.maximumf %38, %39 : vector<30x256xf32>
    %41 = vector.broadcast %9 : vector<30x1xf32> to vector<30x256xf32>
    %42 = arith.mulf %40, %41 : vector<30x256xf32>
    %cst_9 = arith.constant dense<0.000000e+00> : vector<256xf32>
    %43 = vector.multi_reduction <add>, %42, %cst_9 [0] : vector<30x256xf32> to vector<256xf32>
    %44 = vector.shape_cast %43 : vector<256xf32> to vector<1x256xf32>
    %45 = vector.broadcast %10 : vector<30x1xf32> to vector<30x256xf32>
    %46 = arith.mulf %40, %45 : vector<30x256xf32>
    %cst_10 = arith.constant dense<0.000000e+00> : vector<256xf32>
    %47 = vector.multi_reduction <add>, %46, %cst_10 [0] : vector<30x256xf32> to vector<256xf32>
    %48 = vector.shape_cast %47 : vector<256xf32> to vector<1x256xf32>
    %49 = vector.broadcast %11 : vector<30x1xf32> to vector<30x256xf32>
    %50 = arith.mulf %40, %49 : vector<30x256xf32>
    %cst_11 = arith.constant dense<0.000000e+00> : vector<256xf32>
    %51 = vector.multi_reduction <add>, %50, %cst_11 [0] : vector<30x256xf32> to vector<256xf32>
    %52 = vector.shape_cast %51 : vector<256xf32> to vector<1x256xf32>
    %53 = tpu.concatenate %44, %48, %52 in 0 : vector<1x256xf32>, vector<1x256xf32>, vector<1x256xf32> -> vector<3x256xf32>
    %54 = vector.broadcast %3 : vector<3x1xf32> to vector<3x256xf32>
    %55 = arith.addf %53, %54 : vector<3x256xf32>
    %cst_12 = arith.constant 0.000000e+00 : f32
    %56 = vector.broadcast %cst_12 : f32 to vector<3x256xf32>
    %57 = arith.maximumf %55, %56 : vector<3x256xf32>
    %c0_13 = arith.constant 0 : index
    %c0_14 = arith.constant 0 : index
    %58 = vector.load %arg6[%c0_13, %c0_14] : memref<3x512xf32, #tpu.memory_space<vmem>>, vector<3x256xf32>
    tpu.vector_store %arg6[%c0_13, %c0_14], %57 {strides = array<i32>} : memref<3x512xf32, #tpu.memory_space<vmem>>, vector<3x256xf32>,
    %c0_15 = arith.constant 0 : index
    %c256 = arith.constant 256 : index
    %59 = vector.load %arg1[%c0_15, %c256] : memref<5x512xf32, #tpu.memory_space<vmem>>, vector<5x256xf32>
    %60 = vector.extract_strided_slice %59 {offsets = [0, 0], sizes = [1, 256], strides = [1, 1]} : vector<5x256xf32> to vector<1x256xf32>
    %61 = vector.broadcast %4 : vector<30x1xf32> to vector<30x256xf32>
    %62 = vector.broadcast %60 : vector<1x256xf32> to vector<30x256xf32>
    %63 = arith.mulf %61, %62 : vector<30x256xf32>
    %64 = vector.broadcast %1 : vector<30x1xf32> to vector<30x256xf32>
    %65 = arith.addf %64, %63 : vector<30x256xf32>
    %66 = vector.extract_strided_slice %59 {offsets = [1, 0], sizes = [1, 256], strides = [1, 1]} : vector<5x256xf32> to vector<1x256xf32>
    %67 = vector.broadcast %5 : vector<30x1xf32> to vector<30x256xf32>
    %68 = vector.broadcast %66 : vector<1x256xf32> to vector<30x256xf32>
    %69 = arith.mulf %67, %68 : vector<30x256xf32>
    %70 = arith.addf %65, %69 : vector<30x256xf32>
    %71 = vector.extract_strided_slice %59 {offsets = [2, 0], sizes = [1, 256], strides = [1, 1]} : vector<5x256xf32> to vector<1x256xf32>
    %72 = vector.broadcast %6 : vector<30x1xf32> to vector<30x256xf32>
    %73 = vector.broadcast %71 : vector<1x256xf32> to vector<30x256xf32>
    %74 = arith.mulf %72, %73 : vector<30x256xf32>
    %75 = arith.addf %70, %74 : vector<30x256xf32>
    %76 = vector.extract_strided_slice %59 {offsets = [3, 0], sizes = [1, 256], strides = [1, 1]} : vector<5x256xf32> to vector<1x256xf32>
    %77 = vector.broadcast %7 : vector<30x1xf32> to vector<30x256xf32>
    %78 = vector.broadcast %76 : vector<1x256xf32> to vector<30x256xf32>
    %79 = arith.mulf %77, %78 : vector<30x256xf32>
    %80 = arith.addf %75, %79 : vector<30x256xf32>
    %81 = vector.extract_strided_slice %59 {offsets = [4, 0], sizes = [1, 256], strides = [1, 1]} : vector<5x256xf32> to vector<1x256xf32>
    %82 = vector.broadcast %8 : vector<30x1xf32> to vector<30x256xf32>
    %83 = vector.broadcast %81 : vector<1x256xf32> to vector<30x256xf32>
    %84 = arith.mulf %82, %83 : vector<30x256xf32>
    %85 = arith.addf %80, %84 : vector<30x256xf32>
    %cst_16 = arith.constant 0.000000e+00 : f32
    %86 = vector.broadcast %cst_16 : f32 to vector<30x256xf32>
    %87 = arith.maximumf %85, %86 : vector<30x256xf32>
    %88 = vector.broadcast %9 : vector<30x1xf32> to vector<30x256xf32>
    %89 = arith.mulf %87, %88 : vector<30x256xf32>
    %cst_17 = arith.constant dense<0.000000e+00> : vector<256xf32>
    %90 = vector.multi_reduction <add>, %89, %cst_17 [0] : vector<30x256xf32> to vector<256xf32>
    %91 = vector.shape_cast %90 : vector<256xf32> to vector<1x256xf32>
    %92 = vector.broadcast %10 : vector<30x1xf32> to vector<30x256xf32>
    %93 = arith.mulf %87, %92 : vector<30x256xf32>
    %cst_18 = arith.constant dense<0.000000e+00> : vector<256xf32>
    %94 = vector.multi_reduction <add>, %93, %cst_18 [0] : vector<30x256xf32> to vector<256xf32>
    %95 = vector.shape_cast %94 : vector<256xf32> to vector<1x256xf32>
    %96 = vector.broadcast %11 : vector<30x1xf32> to vector<30x256xf32>
    %97 = arith.mulf %87, %96 : vector<30x256xf32>
    %cst_19 = arith.constant dense<0.000000e+00> : vector<256xf32>
    %98 = vector.multi_reduction <add>, %97, %cst_19 [0] : vector<30x256xf32> to vector<256xf32>
    %99 = vector.shape_cast %98 : vector<256xf32> to vector<1x256xf32>
    %100 = tpu.concatenate %91, %95, %99 in 0 : vector<1x256xf32>, vector<1x256xf32>, vector<1x256xf32> -> vector<3x256xf32>
    %101 = vector.broadcast %3 : vector<3x1xf32> to vector<3x256xf32>
    %102 = arith.addf %100, %101 : vector<3x256xf32>
    %cst_20 = arith.constant 0.000000e+00 : f32
    %103 = vector.broadcast %cst_20 : f32 to vector<3x256xf32>
    %104 = arith.maximumf %102, %103 : vector<3x256xf32>
    %c0_21 = arith.constant 0 : index
    %c256_22 = arith.constant 256 : index
    %105 = vector.load %arg6[%c0_21, %c256_22] : memref<3x512xf32, #tpu.memory_space<vmem>>, vector<3x256xf32>
    tpu.vector_store %arg6[%c0_21, %c256_22], %104 {strides = array<i32>} : memref<3x512xf32, #tpu.memory_space<vmem>>, vector<3x256xf32>,
    return
  }
  func.func @transform_0(%arg0: i32) -> (i32, i32) {
    %c0_i32 = arith.constant 0 : i32
    %c0_i32_0 = arith.constant 0 : i32
    return %c0_i32, %arg0 : i32, i32
  }
  func.func @transform_1(%arg0: i32) -> (i32, i32) {
    %c0_i32 = arith.constant 0 : i32
    %c0_i32_0 = arith.constant 0 : i32
    %c0_i32_1 = arith.constant 0 : i32
    return %c0_i32, %c0_i32_0 : i32, i32
  }
  func.func @transform_2(%arg0: i32) -> (i32, i32) {
    %c0_i32 = arith.constant 0 : i32
    %c0_i32_0 = arith.constant 0 : i32
    %c0_i32_1 = arith.constant 0 : i32
    return %c0_i32, %c0_i32_0 : i32, i32
  }
  func.func @transform_3(%arg0: i32) -> (i32, i32) {
    %c0_i32 = arith.constant 0 : i32
    %c0_i32_0 = arith.constant 0 : i32
    %c0_i32_1 = arith.constant 0 : i32
    return %c0_i32, %c0_i32_0 : i32, i32
  }
  func.func @transform_4(%arg0: i32) -> (i32, i32) {
    %c0_i32 = arith.constant 0 : i32
    %c0_i32_0 = arith.constant 0 : i32
    %c0_i32_1 = arith.constant 0 : i32
    return %c0_i32, %c0_i32_0 : i32, i32
  }
  func.func @transform_5(%arg0: i32) -> (i32, i32) {
    %c0_i32 = arith.constant 0 : i32
    %c0_i32_0 = arith.constant 0 : i32
    return %c0_i32, %arg0 : i32, i32
  }
}

</mosaic_0001>

<bundles_post_ra>
// kernel: drivemind_forward_t.1
= control target key start
LH: loop header
LB: loop body
LE: loop exit
PB: predicated region body
PF: predicated region fallthrough
CT: control target
= control target key end

     0   :  { %10 = vsyncpa [#allocation3], 0  ;;  %s1667_s0 = inlined_call_operand.vmem [shape: f32[5,1024], index: 0, kind: input, shape index: {}]   ;;  %s1668_s1 = inlined_call_operand.vmem [shape: f32[30,5], index: 1, kind: input, shape index: {}]   ;;  %s1669_s2 = inlined_call_operand.vmem [shape: f32[30,1], index: 2, kind: input, shape index: {}]   ;;  %s1670_s3 = inlined_call_operand.vmem [shape: f32[30,3], index: 3, kind: input, shape index: {}]   ;;  %s1671_s4 = inlined_call_operand.vmem [shape: f32[3,1], index: 4, kind: input, shape index: {}]   ;;  %s1672_s5 = inlined_call_operand.hbm [shape: f32[3,1024], index: 5, kind: output, shape index: {}]  }
   0x1   :  { %12 = vsyncpa [#allocation3 + $0x1], 0  ;;  %s1111_s18 = smov 0   ;;  %s1113_s19 = smov 0  }
   0x2   :  { %s1115_s20 = smov 0   ;;  %s1117_s21 = smov 0  }
   0x3 LB: > { %s1132_s22 = sadd.s32 4294967295, %s1073_s21   ;;  %s931_s23 = sadd.s32 4294967294, %s1073_s21   ;;  %s1073_s21 = sphi %s1117_s21, %s1734_s21   ;;  %s1069_s20 = sphi %s1115_s20, %s1733_s20   ;;  %s1065_s19 = sphi %s1113_s19, %s1732_s19   ;;  %s1061_s18 = sphi %s1111_s18, %s1731_s18  }
   0x4   : > { %s1136_s24 = sadd.s32 1, %s1073_s21   ;;  %s135_s25 = sadd.s32 1, %s1069_s20 }
   0x5   : > { %s132_s26 = ssub.s32 %s1073_s21, %s1136_s24  ;;  %p145_p0 = scmp.ne.s32.totalorder %s1069_s20, %s1065_s19 }
   0x6   : > { %p133_p1 = scmp.eq.s32.totalorder %s132_s26, 0  ;;  %p146_p2 = scmp.eq.s32.totalorder %s1132_s22, 1 }
   0x7   : > { %p151_p3 = scmp.ne.s32.totalorder %s1065_s19, %s1061_s18  ;;  %p152_p4 = scmp.eq.s32.totalorder %s931_s23, 1 }
   0x8   : > { %s1147_s27 = scalar_select %p133_p1, %s1069_s20, %s135_s25  }
   0x9   : > { %p1149_p5 = por %p146_p2, %p145_p0  ;;  %p1153_p6 = por %p152_p4, %p151_p3 }
   0xa   : > { %p934_p7 = scmp.ge.s32.totalorder %s1073_s21, 1  ;;  %p191_p8 = scmp.lt.s32.totalorder %s1073_s21, 3 }
   0xc   : > { %p192_p9 = pnand %p934_p7, %p191_p8 }
   0xe   : > { %195 = sbr.rel (%p192_p9) target bundleno = 291 (0x123), region = 40 }
  0x15   : > { %v228_v0 = vld [vmem:[%s1668_s1 + $0x10] sm:$0xff]  ;;  %v226_v1 = vld [vmem:[%s1668_s1] sm:$0xff]  ;;  %v1075_v2 = vmov 1   ;;  %v1076_v3 = vmov 0   ;;  %v229_v4 = vld [vmem:[%s1668_s1 + $0x18] sm:$0x3f]  ;;  %v261_v25 = vlaneseq }
  0x16   : > { %989 = vset.pattern.permute.xlu0 %v1075_v2  ;;  %988 = vset.pattern.permute.xlu1 %v1076_v3  ;;  %v1077_v5 = vmov 2   ;;  %v231_v6 = vld [vmem:[%s1669_s2 + $0x8] sm:$0xff]  ;;  %v233_v7 = vld [vmem:[%s1669_s2 + $0x18] sm:$0x3f]  ;;  %v1078_v9 = vmov 3   ;;  %v1079_v10 = vmov 4  }
  0x17   : > { %253 = vperm.xlu1 %988, %v228_v0   ;;  %306 = vperm.xlu0 %989, %v226_v1   ;;  %v227_v8 = vld [vmem:[%s1668_s1 + $0x8] sm:$0xff]  ;;  %v230_v11 = vld [vmem:[%s1669_s2] sm:$0xff]  ;;  %v232_v12 = vld [vmem:[%s1669_s2 + $0x10] sm:$0xff]  ;;  %s936_s15 = sshll.u32 %s1132_s22, 2  ;;  %v262_v28 = vshrl.u32 %v261_v25, 7  ;;  %vm503_vm0 = vcmask 1045504  }
  0x18   : > { %v234_v13 = vld [vmem:[%s1670_s3] sm:$0xff]  ;;  %v236_v14 = vld [vmem:[%s1670_s3 + $0x10] sm:$0xff]  ;;  %v235_v15 = vld [vmem:[%s1670_s3 + $0x8] sm:$0xff]  ;;  %p220_p10 = scmp.lt.s32.totalorder %s936_s15, 7  ;;  %vm610_vm1 = vcmask 1040384   ;;  %vm613_vm2 = vcmask 1041408  }
  0x19   : > { %v237_v16 = vld [vmem:[%s1670_s3 + $0x18] sm:$0x3f]  ;;  %v238_v17 = vld [vmem:[%s1671_s4] sm:$0x7]  ;;  %v263_v31 = vsub.s32 0, %v262_v28  ;;  %v323_v34 = vsub.s32 1, %v262_v28 }
  0x1a   : > { %s1736_s15 = smov (!%p220_p10, %s936_s15), 7  ;;  %v363_v38 = vsub.s32 2, %v262_v28  ;;  %v403_v39 = vsub.s32 3, %v262_v28  ;;  %v443_v42 = vsub.s32 4, %v262_v28  ;;  %s216_s26 = sand.u32 1, %s1065_s19  }
  0x1b   : > { %258 = vperm.xlu1 %988, %v229_v4   ;;  %991 = vset.pattern.permute.xlu0 %v1077_v5  ;;  %s937_s16 = sshll.u32 %s1736_s15, 3  ;;  %s935_s30 = sshll.u32 %s216_s26, 4 }
  0x1c   : > { %346 = vperm.xlu0 %991, %v226_v1   ;;  %s223_s25 = scalar_lea.vmem %s1667_s0, %s937_s16  ;;  %s943_s6 = sshll.u32 %s1132_s22, 8 }
  0x1d   : > { %v239_v32 = vld [vmem:[%s223_s25] sm:$0x1f]  ;;  %v240_v33 = vld [vmem:[%s223_s25 + $0x8] sm:$0x1f]  ;;  %v630_v36 = vld [vmem:[%s223_s25 + $0x10] sm:$0x1f]  ;;  %s1623_s11 = scalar_lea.hbm %s1672_s5, %s943_s6 }
  0x1e   : > { %v631_v37 = vld [vmem:[%s223_s25 + $0x18] sm:$0x1f]  ;;  %v1236_v40 = vrot.slane %v239_v32, %v263_v31  ;;  %v1238_v41 = vrot.slane %v240_v33, %v263_v31  ;;  %v1242_v44 = vrot.slane %v630_v36, %v263_v31  ;;  %v1246_v46 = vrot.slane %v239_v32, %v323_v34  ;;  %s218_s7 = scalar_lea.vmem [#allocation2], %s935_s30  ;;  %s858_s22 = scalar_lea.sflag [#allocation3], %s216_s26 }
  0x1f   : > { %284 = vperm.xlu1 %988, %v231_v6   ;;  %v1244_v45 = vrot.slane %v631_v37, %v263_v31  ;;  %v1248_v47 = vrot.slane %v240_v33, %v323_v34  ;;  %v1250_v48 = vrot.slane %v630_v36, %v323_v34  ;;  %v1252_v49 = vrot.slane %v631_v37, %v323_v34  ;;  %s872_s8 = sshll.u32 %s218_s7, 4  ;;  %s1080_s13 = smov [#allocation2]   ;;  %s1625_s8 = int_to_ptr.vmem [resolvable:$true] %s872_s8 }
  0x20   : > { %354 = vperm.xlu0 %991, %v228_v0   ;;  %v1254_v50 = vrot.slane %v239_v32, %v363_v38  ;;  %v1256_v51 = vrot.slane %v240_v33, %v363_v38  ;;  %v1260_v53 = vrot.slane %v630_v36, %v363_v38  ;;  %v1262_v54 = vrot.slane %v631_v37, %v363_v38  ;;  %s1011_s12 = scalar_lea.vmem %s1625_s8, 256  ;;  %s1015_s14 = sshll.u32 %s1080_s13, 4  ;;  %s1016_s14 = int_to_ptr.vmem [resolvable:$false] %s1015_s14 }
  0x21   : > { %v1264_v55 = vrot.slane %v239_v32, %v403_v39  ;;  %v1266_v56 = vrot.slane %v240_v33, %v403_v39  ;;  %v1268_v57 = vrot.slane %v630_v36, %v403_v39  ;;  %v1270_v58 = vrot.slane %v631_v37, %v403_v39  ;;  %p1012_p11 = scmp.ne.s32.totalorder %s1625_s8, %s1011_s12  ;;  %s1017_s15 = scalar_lea.vmem %s1016_s14, 512 }
  0x22   : > { %1687 = vst [vmem:[#allocation5_spill] sm:$0xff] %v1254_v50  ;;  %1688 = vst [vmem:[#allocation6_spill] sm:$0xff] %v1256_v51  ;;  %v1272_v59 = vrot.slane %v239_v32, %v443_v42  ;;  %v1274_v60 = vrot.slane %v240_v33, %v443_v42  ;;  %v1282_v63 = vrot.slane %v630_v36, %v443_v42  ;;  %p1018_p0 = scmp.lt.s32.totalorder %s1625_s8, %s1016_s14  ;;  %p1019_p1 = scmp.lt.s32.totalorder %s1017_s15, %s1011_s12 }
  0x23   : > { %294 = vperm.xlu1 %988, %v233_v7   ;;  %1689 = vst [vmem:[#allocation7_spill] sm:$0xff] %v1260_v53  ;;  %p1013_p12 = pnand %p1012_p11, %p1149_p5 }
  0x24   : > { %995 = vset.pattern.permute.xlu0 %v1078_v9  ;;  %1690 = vst [vmem:[#allocation8_spill] sm:$0xff] %v1272_v59  ;;  %1691 = vst [vmem:[#allocation9_spill] sm:$0xff] %v1274_v60  ;;  %p1020_p2 = por %p1019_p1, %p1018_p0 }
  0x25   : > { %390 = vperm.xlu0 %995, %v227_v8   ;;  %1692 = vst [vmem:[#allocation10_spill] sm:$0xff] %v1282_v63  ;;  %p1014_p13 = pneg %p1013_p12 }
  0x27   : > { %990 = vset.pattern.permute.xlu1 %v1075_v2  ;;  %p1021_p3 = pnand %p1020_p2, %p1014_p13 }
  0x28   : > { %310 = vperm.xlu1 %990, %v227_v8  }
  0x29   : > { %998 = vset.pattern.permute.xlu0 %v1079_v10 }
  0x2a   : > { %426 = vperm.xlu0 %998, %v226_v1  }
  0x2c   : > { %314 = vperm.xlu1 %990, %v228_v0  }
  0x2e   : > { %434 = vperm.xlu0 %998, %v228_v0  }
  0x30   : > { %992 = vset.pattern.permute.xlu1 %v1077_v5 }
  0x31   : > { %350 = vperm.xlu1 %992, %v227_v8  }
  0x32   : > { %1001 = vset.pattern.permute.xlu0 %v1076_v3 }
  0x33   : > { %243 = vperm.xlu0 %1001, %v226_v1  }
  0x35   : > { %993 = vset.pattern.permute.xlu1 %v1075_v2 }
  0x36   : > { %318 = vperm.xlu1 %993, %v229_v4  }
  0x37   : > { %248 = vperm.xlu0 %1001, %v227_v8  }
  0x3a   : > { %994 = vset.pattern.permute.xlu1 %v1078_v9 }
  0x3b   : > { %386 = vperm.xlu1 %994, %v226_v1   ;;  %279 = vperm.xlu0 %1001, %v230_v11  }
  0x3f   : > { %996 = vset.pattern.permute.xlu1 %v1077_v5  ;;  %289 = vperm.xlu0 %1001, %v232_v12  }
  0x40   : > { %358 = vperm.xlu1 %996, %v229_v4  }
  0x43   : > { %475 = vperm.xlu0 %1001, %v234_v13  }
  0x44   : > { %997 = vset.pattern.permute.xlu1 %v1078_v9 }
  0x45   : > { %394 = vperm.xlu1 %997, %v228_v0   ;;  %v1284_v0 = vrot.slane %v631_v37, %v443_v42 }
  0x47   : > { %485 = vperm.xlu0 %1001, %v236_v14   ;;  %1693 = vst [vmem:[#allocation11_spill] sm:$0xff] %v1284_v0 }
  0x49   : > { %999 = vset.pattern.permute.xlu1 %v1079_v10 }
  0x4a   : > { %430 = vperm.xlu1 %999, %v227_v8  }
  0x4b   : > { %1006 = vset.pattern.permute.xlu0 %v1075_v2 }
  0x4c   : > { %527 = vperm.xlu0 %1006, %v235_v15  }
  0x4e   : > { %1000 = vset.pattern.permute.xlu1 %v1078_v9 }
  0x4f   : > { %398 = vperm.xlu1 %1000, %v229_v4  }
  0x50   : > { %535 = vperm.xlu0 %1006, %v237_v16  }
  0x53   : > { %1002 = vset.pattern.permute.xlu1 %v1079_v10 }
  0x54   : > { %438 = vperm.xlu1 %1002, %v229_v4   ;;  %1010 = vset.pattern.permute.xlu0 %v1076_v3 }
  0x55   : > { %618 = vperm.xlu0 %1010, %v238_v17  }
  0x58   : > { %1003 = vset.pattern.permute.xlu1 %v1076_v3 }
  0x59   : > { %480 = vperm.xlu1 %1003, %v235_v15  }
  0x5d   : > { %1004 = vset.pattern.permute.xlu1 %v1075_v2 }
  0x5e   : > { %523 = vperm.xlu1 %1004, %v234_v13  }
  0x62   : > { %1005 = vset.pattern.permute.xlu1 %v1077_v5 }
  0x63   : > { %567 = vperm.xlu1 %1005, %v234_v13  }
  0x67   : > { %571 = vperm.xlu1 %1005, %v235_v15  }
  0x6b   : > { %1007 = vset.pattern.permute.xlu1 %v1075_v2 }
  0x6c   : > { %531 = vperm.xlu1 %1007, %v236_v14  }
  0x70   : > { %1008 = vset.pattern.permute.xlu1 %v1076_v3 }
  0x71   : > { %490 = vperm.xlu1 %1008, %v237_v16  }
  0x75   : > { %1009 = vset.pattern.permute.xlu1 %v1077_v5 }
  0x76   : > { %575 = vperm.xlu1 %1009, %v236_v14  }
  0x7a   : > { %579 = vperm.xlu1 %1009, %v237_v16  }
  0x96   : > { %v254_v18 = vpop.permute.xlu1 %253  ;;  %v307_v19 = vpop.permute.xlu0 %306 }
  0x97   : > { %v1277_v61 = vmul.f32 %v1236_v40, %v254_v18  ;;  %v1280_v62 = vmul.f32 %v1238_v41, %v254_v18  ;;  %v1289_v2 = vmul.f32 %v1242_v44, %v254_v18  ;;  %v1292_v3 = vmul.f32 %v1244_v45, %v254_v18 }
  0x98   : > { %v1295_v4 = vmul.f32 %v1246_v46, %v307_v19  ;;  %v1298_v5 = vmul.f32 %v1248_v47, %v307_v19  ;;  %v1303_v8 = vmul.f32 %v1250_v48, %v307_v19  ;;  %v1306_v9 = vmul.f32 %v1252_v49, %v307_v19 }
  0x9a   : > { %v259_v20 = vpop.permute.xlu1 %258 }
  0x9b   : > { %v1214_v21 = vpop.permute.xlu0 %346  ;;  %v275_v6 = vmul.f32 %v1236_v40, %v259_v20  ;;  %v276_v7 = vmul.f32 %v1238_v41, %v259_v20  ;;  %v646_v11 = vmul.f32 %v1242_v44, %v259_v20  ;;  %v647_v12 = vmul.f32 %v1244_v45, %v259_v20 }
  0x9c   : > { %v1312_v13 = vmul.f32 %v1254_v50, %v1214_v21  ;;  %v1316_v14 = vmul.f32 %v1256_v51, %v1214_v21  ;;  %v1320_v15 = vmul.f32 %v1260_v53, %v1214_v21  ;;  %v1324_v16 = vmul.f32 %v1262_v54, %v1214_v21 }
  0x9e   : > { %v1217_v22 = vpop.permute.xlu1 %284 }
  0x9f   : > { %v1219_v23 = vpop.permute.xlu0 %354 }
  0xa0   : > { %v1328_v17 = vmul.f32 %v1254_v50, %v1219_v23  ;;  %v1332_v18 = vmul.f32 %v1256_v51, %v1219_v23  ;;  %v1338_v25 = vmul.f32 %v1260_v53, %v1219_v23  ;;  %v1342_v21 = vmul.f32 %v1262_v54, %v1219_v23 }
  0xa2   : > { %v1221_v24 = vpop.permute.xlu1 %294  ;;  %1694 = vst [vmem:[#allocation12_spill] sm:$0xff] %v1338_v25  ;;  %1695 = vst [vmem:[#allocation13_spill] sm:$0xff] %v1342_v21 }
  0xa3   : > { %v303_v19 = vadd.f32 %v1221_v24, %v275_v6  ;;  %v304_v20 = vadd.f32 %v1221_v24, %v276_v7  ;;  %v654_v31 = vadd.f32 %v646_v11, %v1221_v24  ;;  %v655_v32 = vadd.f32 %v647_v12, %v1221_v24 }
  0xa4   : > { %v1223_v26 = vpop.permute.xlu0 %390 }
  0xa5   : > { %v1350_v33 = vmul.f32 %v1264_v55, %v1223_v26  ;;  %v1354_v34 = vmul.f32 %v1266_v56, %v1223_v26  ;;  %v1358_v36 = vmul.f32 %v1268_v57, %v1223_v26  ;;  %v1362_v23 = vmul.f32 %v1270_v58, %v1223_v26 }
  0xa7   : > { %v1225_v27 = vpop.permute.xlu1 %310  ;;  %1696 = vst [vmem:[#allocation14_spill] sm:$0xff] %v1350_v33  ;;  %1697 = vst [vmem:[#allocation15_spill] sm:$0xff] %v1354_v34 }
  0xa8   : > { %1698 = vst [vmem:[#allocation16_spill] sm:$0xff] %v1358_v36  ;;  %1699 = vst [vmem:[#allocation17_spill] sm:$0xff] %v1362_v23  ;;  %v331_v37 = vmul.f32 %v1246_v46, %v1225_v27  ;;  %v332_v24 = vmul.f32 %v1248_v47, %v1225_v27  ;;  %v666_v38 = vmul.f32 %v1250_v48, %v1225_v27 }
  0xa9   : > { %v1227_v29 = vpop.permute.xlu0 %426  ;;  %v667_v39 = vmul.f32 %v1252_v49, %v1225_v27 }
  0xaa   : > { %v1374_v42 = vmul.f32 %v1272_v59, %v1227_v29  ;;  %v1378_v26 = vmul.f32 %v1274_v60, %v1227_v29  ;;  %v1382_v7 = vmul.f32 %v1282_v63, %v1227_v29  ;;  %v1386_v11 = vmul.f32 %v1284_v0, %v1227_v29 }
  0xab   : > { %v1232_v30 = vpop.permute.xlu1 %314 }
  0xac   : > { %1700 = vst [vmem:[#allocation18_spill] sm:$0xff] %v1374_v42  ;;  %1701 = vst [vmem:[#allocation19_spill] sm:$0xff] %v1378_v26  ;;  %v333_v23 = vmul.f32 %v1246_v46, %v1232_v30  ;;  %v334_v36 = vmul.f32 %v1248_v47, %v1232_v30  ;;  %v1398_v34 = vmul.f32 %v1250_v48, %v1232_v30 }
  0xad   : > { %v1234_v35 = vpop.permute.xlu0 %434  ;;  %1702 = vst [vmem:[#allocation20_spill] sm:$0xff] %v1382_v7  ;;  %1703 = vst [vmem:[#allocation21_spill] sm:$0xff] %v1386_v11  ;;  %v1402_v29 = vmul.f32 %v1252_v49, %v1232_v30 }
  0xae   : > { %v1408_v11 = vmul.f32 %v1272_v59, %v1234_v35  ;;  %v1412_v7 = vmul.f32 %v1274_v60, %v1234_v35  ;;  %v1424_v59 = vmul.f32 %v1282_v63, %v1234_v35  ;;  %v1428_v60 = vmul.f32 %v1284_v0, %v1234_v35 }
  0xb0   : > { %v1240_v43 = vpop.permute.xlu1 %350  ;;  %1705 = vst [vmem:[#allocation23_spill] sm:$0xff] %v1408_v11  ;;  %1706 = vst [vmem:[#allocation24_spill] sm:$0xff] %v1412_v7 }
  0xb1   : > { %1707 = vst [vmem:[#allocation25_spill] sm:$0xff] %v1424_v59  ;;  %1708 = vst [vmem:[#allocation26_spill] sm:$0xff] %v1428_v60  ;;  %v371_v7 = vmul.f32 %v1254_v50, %v1240_v43 }
  0xb2   : > { %v1258_v52 = vpop.permute.xlu0 %243 }
  0xb3   : > { %v269_v27 = vmul.f32 %v1236_v40, %v1258_v52  ;;  %v270_v12 = vmul.f32 %v1238_v41, %v1258_v52  ;;  %v640_v26 = vmul.f32 %v1242_v44, %v1258_v52  ;;  %v641_v30 = vmul.f32 %v1244_v45, %v1258_v52 }
  0xb4   : > { %v372_v52 = vmul.f32 %v1256_v51, %v1240_v43 }
  0xb5   : > { %v1286_v1 = vpop.permute.xlu1 %318 }
  0xb6   : > { %v249_v10 = vpop.permute.xlu0 %248  ;;  %v670_v59 = vmul.f32 %v1250_v48, %v1286_v1  ;;  %v671_v35 = vmul.f32 %v1252_v49, %v1286_v1  ;;  %v690_v49 = vmul.f32 %v1260_v53, %v1240_v43 }
  0xb7   : > { %v271_v21 = vmul.f32 %v1236_v40, %v249_v10  ;;  %v272_v25 = vmul.f32 %v1238_v41, %v249_v10  ;;  %v642_v42 = vmul.f32 %v1242_v44, %v249_v10  ;;  %v335_v44 = vmul.f32 %v1246_v46, %v1286_v1 }
  0xb9   : > { %v650_v0 = vadd.f32 %v642_v42, %v1217_v22  ;;  %v678_v42 = vadd.f32 %v670_v59, %v654_v31 }
  0xba   : > { %v1344_v28 = vpop.permute.xlu1 %386  ;;  %v280_v6 = vpop.permute.xlu0 %279 }
  0xbb   : > { %v297_v40 = vadd.f32 %v280_v6, %v269_v27  ;;  %v298_v41 = vadd.f32 %v280_v6, %v270_v12  ;;  %v299_v27 = vadd.f32 %v1217_v22, %v271_v21  ;;  %v300_v12 = vadd.f32 %v1217_v22, %v272_v25 }
  0xbc   : > { %v648_v46 = vadd.f32 %v640_v26, %v280_v6  ;;  %v649_v11 = vadd.f32 %v641_v30, %v280_v6  ;;  %v343_v25 = vadd.f32 %v335_v44, %v303_v19  ;;  %v674_v6 = vadd.f32 %v666_v38, %v650_v0 }
  0xbd   : > { %v338_v51 = vadd.f32 %v1298_v5, %v298_v41  ;;  %v340_v26 = vadd.f32 %v332_v24, %v300_v12  ;;  %v410_v59 = vmul.f32 %v1266_v56, %v1344_v28  ;;  %v1710_v24 = vld [vmem:[#allocation5_spill] sm:$0xff] }
  0xbe   : > { %v672_v5 = vadd.f32 %v1303_v8, %v648_v46  ;;  %v712_v8 = vmul.f32 %v1268_v57, %v1344_v28  ;;  %v698_v12 = vadd.f32 %v690_v49, %v674_v6 }
  0xbf   : > { %v1404_v33 = vpop.permute.xlu1 %358 }
  0xc0   : > { %1704 = vst [vmem:[#allocation22_spill] sm:$0xff] %v1404_v33  ;;  %v643_v33 = vmul.f32 %v1244_v45, %v249_v10  ;;  %v336_v45 = vmul.f32 %v1248_v47, %v1286_v1  ;;  %v290_v10 = vpop.permute.xlu0 %289  ;;  %v337_v47 = vadd.f32 %v1295_v4, %v297_v40  ;;  %v691_v1 = vmul.f32 %v1262_v54, %v1240_v43 }
  0xc1   : > { %v301_v48 = vadd.f32 %v290_v10, %v1277_v61  ;;  %v302_v50 = vadd.f32 %v290_v10, %v1280_v62  ;;  %v673_v61 = vadd.f32 %v1306_v9, %v649_v11  ;;  %v378_v40 = vadd.f32 %v1316_v14, %v338_v51 }
  0xc2   : > { %v651_v63 = vadd.f32 %v643_v33, %v1217_v22  ;;  %v344_v21 = vadd.f32 %v336_v45, %v304_v20  ;;  %v679_v22 = vadd.f32 %v671_v35, %v655_v32  ;;  %v339_v33 = vadd.f32 %v331_v37, %v299_v27  ;;  %v1713_v45 = vld [vmem:[#allocation18_spill] sm:$0xff]  ;;  %v1714_v35 = vld [vmem:[#allocation19_spill] sm:$0xff] }
  0xc3   : > { %v377_v62 = vadd.f32 %v1312_v13, %v337_v47  ;;  %v341_v41 = vadd.f32 %v333_v23, %v301_v48  ;;  %v342_v53 = vadd.f32 %v334_v36, %v302_v50  ;;  %v409_v43 = vmul.f32 %v1264_v55, %v1344_v28 }
  0xc4   : > { %v395_v60 = vpop.permute.xlu1 %394  ;;  %v675_v4 = vadd.f32 %v667_v39, %v651_v63  ;;  %v652_v0 = vadd.f32 %v1289_v2, %v290_v10  ;;  %v653_v63 = vadd.f32 %v1292_v3, %v290_v10  ;;  %v713_v9 = vmul.f32 %v1270_v58, %v1344_v28  ;;  %v1486_v44 = vpop.permute.xlu0 %475 }
  0xc5   : > { %v413_v51 = vmul.f32 %v1264_v55, %v395_v60  ;;  %v414_v50 = vmul.f32 %v1266_v56, %v395_v60  ;;  %v696_v13 = vadd.f32 %v1320_v15, %v672_v5  ;;  %v697_v14 = vadd.f32 %v1324_v16, %v673_v61  ;;  %v1711_v15 = vld [vmem:[#allocation6_spill] sm:$0xff]  ;;  %v1712_v16 = vld [vmem:[#allocation7_spill] sm:$0xff] }
  0xc6   : > { %v379_v19 = vadd.f32 %v371_v7, %v339_v33  ;;  %v380_v20 = vadd.f32 %v372_v52, %v340_v26  ;;  %v417_v31 = vadd.f32 %v409_v43, %v377_v62  ;;  %v418_v2 = vadd.f32 %v410_v59, %v378_v40  ;;  %v1715_v33 = vld [vmem:[#allocation12_spill] sm:$0xff]  ;;  %v1716_v26 = vld [vmem:[#allocation13_spill] sm:$0xff] }
  0xc7   : > { %v381_v3 = vadd.f32 %v1328_v17, %v341_v41  ;;  %v382_v32 = vadd.f32 %v1332_v18, %v342_v53  ;;  %v676_v23 = vadd.f32 %v1398_v34, %v652_v0  ;;  %v677_v28 = vadd.f32 %v1402_v29, %v653_v63  ;;  %v1709_v37 = vld [vmem:[#allocation22_spill] sm:$0xff]  ;;  %v1717_v41 = vld [vmem:[#allocation23_spill] sm:$0xff] }
  0xc8   : > { %v375_v38 = vmul.f32 %v1710_v24, %v1709_v37  ;;  %v376_v39 = vmul.f32 %v1711_v15, %v1709_v37  ;;  %v694_v7 = vmul.f32 %v1712_v16, %v1709_v37  ;;  %v695_v11 = vmul.f32 %v1262_v54, %v1709_v37  ;;  %v486_v37 = vpop.permute.xlu0 %485 }
  0xc9   : > { %v431_v30 = vpop.permute.xlu1 %430  ;;  %v421_v17 = vadd.f32 %v413_v51, %v381_v3  ;;  %v422_v52 = vadd.f32 %v414_v50, %v382_v32  ;;  %v720_v53 = vadd.f32 %v712_v8, %v696_v13  ;;  %v721_v18 = vadd.f32 %v713_v9, %v697_v14  ;;  %v1719_v8 = vld [vmem:[#allocation20_spill] sm:$0xff]  ;;  %v1720_v51 = vld [vmem:[#allocation21_spill] sm:$0xff]  ;;  %v1724_v13 = vld [vmem:[#allocation11_spill] sm:$0xff] }
  0xca   : > { %v716_v34 = vmul.f32 %v1268_v57, %v395_v60  ;;  %v717_v29 = vmul.f32 %v1270_v58, %v395_v60  ;;  %v457_v10 = vadd.f32 %v1713_v45, %v417_v31  ;;  %v458_v27 = vadd.f32 %v1714_v35, %v418_v2  ;;  %v1718_v60 = vld [vmem:[#allocation24_spill] sm:$0xff]  ;;  %v1725_v3 = vld [vmem:[#allocation14_spill] sm:$0xff] }
  0xcb   : > { %v699_v46 = vadd.f32 %v691_v1, %v675_v4  ;;  %v383_v47 = vadd.f32 %v375_v38, %v343_v25  ;;  %v384_v48 = vadd.f32 %v376_v39, %v344_v21  ;;  %v700_v54 = vadd.f32 %v1715_v33, %v676_v23  ;;  %v1721_v21 = vld [vmem:[#allocation8_spill] sm:$0xff]  ;;  %v1722_v4 = vld [vmem:[#allocation9_spill] sm:$0xff]  ;;  %v1726_v23 = vld [vmem:[#allocation15_spill] sm:$0xff] }
  0xcc   : > { %v701_v5 = vadd.f32 %v1716_v26, %v677_v28  ;;  %v702_v62 = vadd.f32 %v694_v7, %v678_v42  ;;  %v703_v40 = vadd.f32 %v695_v11, %v679_v22  ;;  %v461_v43 = vadd.f32 %v1717_v41, %v421_v17  ;;  %v1723_v42 = vld [vmem:[#allocation10_spill] sm:$0xff]  ;;  %v1727_v39 = vld [vmem:[#allocation16_spill] sm:$0xff]  ;;  %v1728_v7 = vld [vmem:[#allocation17_spill] sm:$0xff] }
  0xcd   : > { %v462_v59 = vadd.f32 %v1718_v60, %v422_v52  ;;  %v724_v0 = vadd.f32 %v716_v34, %v700_v54  ;;  %v744_v9 = vadd.f32 %v1719_v8, %v720_v53  ;;  %v745_v49 = vadd.f32 %v1720_v51, %v721_v18  ;;  %v1730_v34 = vld [vmem:[#allocation26_spill] sm:$0xff] }
  0xce   : > { %v399_v36 = vpop.permute.xlu1 %398  ;;  %v725_v63 = vadd.f32 %v717_v29, %v701_v5  ;;  %v1496_v1 = vmax.f32 %v457_v10, 0.0  ;;  %v1498_v25 = vmax.f32 %v458_v27, 0.0  ;;  %v451_v6 = vmul.f32 %v1721_v21, %v431_v30  ;;  %v528_v5 = vpop.permute.xlu0 %527 }
  0xcf   : > { %v452_v50 = vmul.f32 %v1722_v4, %v431_v30  ;;  %v738_v22 = vmul.f32 %v1723_v42, %v431_v30  ;;  %v739_v14 = vmul.f32 %v1724_v13, %v431_v30  ;;  %v415_v31 = vmul.f32 %v1264_v55, %v399_v36 }
  0xd0   : > { %v416_v2 = vmul.f32 %v1266_v56, %v399_v36  ;;  %v419_v32 = vadd.f32 %v1725_v3, %v379_v19  ;;  %v420_v28 = vadd.f32 %v1726_v23, %v380_v20  ;;  %v718_v24 = vmul.f32 %v1268_v57, %v399_v36 }
  0xd1   : > { %v719_v38 = vmul.f32 %v1270_v58, %v399_v36  ;;  %v722_v16 = vadd.f32 %v1727_v39, %v698_v12  ;;  %v723_v11 = vadd.f32 %v1728_v7, %v699_v46  ;;  %v423_v57 = vadd.f32 %v415_v31, %v383_v47  ;;  %v1729_v58 = vld [vmem:[#allocation25_spill] sm:$0xff] }
  0xd2   : > { %v459_v17 = vadd.f32 %v451_v6, %v419_v32  ;;  %v460_v56 = vadd.f32 %v452_v50, %v420_v28  ;;  %v424_v18 = vadd.f32 %v416_v2, %v384_v48  ;;  %v748_v36 = vadd.f32 %v1729_v58, %v724_v0  ;;  %v536_v50 = vpop.permute.xlu0 %535 }
  0xd3   : > { %v439_v61 = vpop.permute.xlu1 %438  ;;  %v746_v52 = vadd.f32 %v738_v22, %v722_v16  ;;  %v747_v53 = vadd.f32 %v739_v14, %v723_v11  ;;  %v749_v29 = vadd.f32 %v1730_v34, %v725_v63  ;;  %v726_v45 = vadd.f32 %v718_v24, %v702_v62 }
  0xd4   : > { %v455_v30 = vmul.f32 %v1721_v21, %v439_v61  ;;  %v456_v55 = vmul.f32 %v1722_v4, %v439_v61  ;;  %v742_v19 = vmul.f32 %v1723_v42, %v439_v61  ;;  %v743_v20 = vmul.f32 %v1724_v13, %v439_v61 }
  0xd5   : > { %v727_v10 = vadd.f32 %v719_v38, %v703_v40  ;;  %v1518_v35 = vmax.f32 %v744_v9, 0.0  ;;  %v1520_v27 = vmax.f32 %v745_v49, 0.0  ;;  %v467_v54 = vmax.f32 %v459_v17, 0.0 }
  0xd6   : > { %v463_v12 = vadd.f32 %v455_v30, %v423_v57  ;;  %v464_v46 = vadd.f32 %v456_v55, %v424_v18  ;;  %v468_v26 = vmax.f32 %v460_v56, 0.0  ;;  %v750_v61 = vadd.f32 %v742_v19, %v726_v45 }
  0xd7   : > { %v751_v41 = vadd.f32 %v743_v20, %v727_v10  ;;  %v1522_v47 = vmax.f32 %v746_v52, 0.0  ;;  %v1524_v48 = vmax.f32 %v747_v53, 0.0  ;;  %v1526_v60 = vmax.f32 %v461_v43, 0.0 }
  0xd8   : > { %v481_v15 = vpop.permute.xlu1 %480  ;;  %v1528_v62 = vmax.f32 %v462_v59, 0.0  ;;  %v1530_v40 = vmax.f32 %v748_v36, 0.0  ;;  %v1532_v0 = vmax.f32 %v749_v29, 0.0  ;;  %v1534_v9 = vmax.f32 %v463_v12, 0.0 }
  0xd9   : > { %v495_v63 = vmul.f32 %v481_v15, %v467_v54  ;;  %v496_v8 = vmul.f32 %v481_v15, %v468_v26  ;;  %v1536_v51 = vmax.f32 %v464_v46, 0.0  ;;  %v762_v49 = vmul.f32 %v1522_v47, %v481_v15 }
  0xda   : > { %v763_v21 = vmul.f32 %v1524_v48, %v481_v15  ;;  %v493_v43 = vmul.f32 %v1486_v44, %v1496_v1  ;;  %v494_v59 = vmul.f32 %v1486_v44, %v1498_v25  ;;  %v1544_v6 = vmax.f32 %v750_v61, 0.0 }
  0xdb   : > { %v1546_v4 = vmax.f32 %v751_v41, 0.0  ;;  %v760_v22 = vmul.f32 %v1518_v35, %v1486_v44  ;;  %v761_v13 = vmul.f32 %v1520_v27, %v1486_v44  ;;  %v497_v14 = vmul.f32 %v486_v37, %v1526_v60 }
  0xdc   : > { %v498_v31 = vmul.f32 %v486_v37, %v1528_v62  ;;  %v764_v2 = vmul.f32 %v1530_v40, %v486_v37  ;;  %v765_v3 = vmul.f32 %v1532_v0, %v486_v37  ;;  %v501_v32 = vadd.f32 %v495_v63, %v493_v43 }
  0xdd   : > { %v524_v33 = vpop.permute.xlu1 %523  ;;  %v512_v23 = vadd.f32 %v496_v8, %v494_v59  ;;  %v768_v28 = vadd.f32 %v762_v49, %v760_v22  ;;  %v778_v24 = vadd.f32 %v763_v21, %v761_v13  ;;  %v544_v38 = vmul.f32 %v536_v50, %v1534_v9 }
  0xde   : > { %v545_v15 = vmul.f32 %v536_v50, %v1536_v51  ;;  %v794_v39 = vmul.f32 %v1544_v6, %v536_v50  ;;  %v795_v44 = vmul.f32 %v1546_v4, %v536_v50  ;;  %v538_v16 = vmul.f32 %v524_v33, %v1496_v1 }
  0xdf   : > { %v539_v7 = vmul.f32 %v524_v33, %v1498_v25  ;;  %v540_v30 = vmul.f32 %v528_v5, %v467_v54  ;;  %v541_v55 = vmul.f32 %v528_v5, %v468_v26  ;;  %v788_v37 = vmul.f32 %v1518_v35, %v524_v33 }
  0xe0   : > { %v789_v17 = vmul.f32 %v1520_v27, %v524_v33  ;;  %v790_v56 = vmul.f32 %v1522_v47, %v528_v5  ;;  %v791_v19 = vmul.f32 %v1524_v48, %v528_v5  ;;  %v502_v20 = vadd.f32 %v501_v32, %v497_v14 }
  0xe1   : > { %v513_v52 = vadd.f32 %v512_v23, %v498_v31  ;;  %v769_v53 = vadd.f32 %v768_v28, %v764_v2  ;;  %v779_v57 = vadd.f32 %v778_v24, %v765_v3  ;;  %v548_v18 = vsel %vm503_vm0, %v544_v38, 0.0 }
  0xe2   : > { %v568_v42 = vpop.permute.xlu1 %567  ;;  %v558_v58 = vsel %vm503_vm0, %v545_v15, 0.0  ;;  %v798_v36 = vsel %vm503_vm0, %v794_v39, 0.0  ;;  %v808_v34 = vsel %vm503_vm0, %v795_v44, 0.0  ;;  %v546_v29 = vadd.f32 %v540_v30, %v538_v16 }
  0xe3   : > { %v556_v45 = vadd.f32 %v541_v55, %v539_v7  ;;  %v796_v10 = vadd.f32 %v790_v56, %v788_v37  ;;  %v806_v12 = vadd.f32 %v791_v19, %v789_v17  ;;  %v582_v49 = vmul.f32 %v568_v42, %v1496_v1 }
  0xe4   : > { %v583_v21 = vmul.f32 %v568_v42, %v1498_v25  ;;  %v816_v43 = vmul.f32 %v1518_v35, %v568_v42  ;;  %v817_v59 = vmul.f32 %v1520_v27, %v568_v42 }
  0xe6   : > { %v572_v11 = vpop.permute.xlu1 %571 }
  0xe7   : > { %v584_v46 = vmul.f32 %v572_v11, %v467_v54  ;;  %v585_v33 = vmul.f32 %v572_v11, %v468_v26  ;;  %v818_v31 = vmul.f32 %v1522_v47, %v572_v11  ;;  %v819_v2 = vmul.f32 %v1524_v48, %v572_v11 }
  0xe9   : > { %v590_v13 = vadd.f32 %v584_v46, %v582_v49  ;;  %v600_v14 = vadd.f32 %v585_v33, %v583_v21  ;;  %v824_v7 = vadd.f32 %v818_v31, %v816_v43  ;;  %v834_v11 = vadd.f32 %v819_v2, %v817_v59 }
  0xeb   : > { %v532_v61 = vpop.permute.xlu1 %531 }
  0xec   : > { %v542_v5 = vmul.f32 %v532_v61, %v1526_v60  ;;  %v543_v41 = vmul.f32 %v532_v61, %v1528_v62  ;;  %v792_v63 = vmul.f32 %v1530_v40, %v532_v61  ;;  %v793_v8 = vmul.f32 %v1532_v0, %v532_v61 }
  0xee   : > { %v547_v50 = vadd.f32 %v546_v29, %v542_v5  ;;  %v557_v54 = vadd.f32 %v556_v45, %v543_v41  ;;  %v797_v26 = vadd.f32 %v796_v10, %v792_v63  ;;  %v807_v22 = vadd.f32 %v806_v12, %v793_v8 }
  0xf0   : > { %v549_v3 = vadd.f32 %v548_v18, %v547_v50  ;;  %v559_v32 = vadd.f32 %v558_v58, %v557_v54  ;;  %v799_v23 = vadd.f32 %v798_v36, %v797_v26  ;;  %v809_v1 = vadd.f32 %v808_v34, %v807_v22  ;;  %v491_v28 = vpop.permute.xlu1 %490 }
  0xf1   : > { %v499_v25 = vmul.f32 %v491_v28, %v1534_v9  ;;  %v500_v35 = vmul.f32 %v491_v28, %v1536_v51  ;;  %v766_v27 = vmul.f32 %v1544_v6, %v491_v28  ;;  %v767_v42 = vmul.f32 %v1546_v4, %v491_v28 }
  0xf2   : > { %v550_v24 = vrot.slane %v549_v3, 4  ;;  %v560_v38 = vrot.slane %v559_v32, 4  ;;  %v800_v15 = vrot.slane %v799_v23, 4  ;;  %v810_v39 = vrot.slane %v809_v1, 4 }
  0xf3   : > { %v504_v47 = vsel %vm503_vm0, %v499_v25, 0.0  ;;  %v514_v48 = vsel %vm503_vm0, %v500_v35, 0.0  ;;  %v770_v44 = vsel %vm503_vm0, %v766_v27, 0.0  ;;  %v780_v16 = vsel %vm503_vm0, %v767_v42, 0.0 }
  0xf4   : > { %v551_v30 = vadd.f32 %v550_v24, %v549_v3  ;;  %v561_v55 = vadd.f32 %v560_v38, %v559_v32  ;;  %v505_v37 = vadd.f32 %v504_v47, %v502_v20  ;;  %v515_v17 = vadd.f32 %v514_v48, %v513_v52 }
  0xf5   : > { %v771_v56 = vadd.f32 %v770_v44, %v769_v53  ;;  %v781_v19 = vadd.f32 %v780_v16, %v779_v57  ;;  %v576_v18 = vpop.permute.xlu1 %575  ;;  %v1588_v34 = vadd.f32 %v800_v15, %v799_v23  ;;  %v1590_v29 = vadd.f32 %v810_v39, %v809_v1 }
  0xf6   : > { %v552_v58 = vrot.slane %v551_v30, 2  ;;  %v562_v36 = vrot.slane %v561_v55, 2  ;;  %v506_v45 = vrot.slane %v505_v37, 4  ;;  %v516_v10 = vrot.slane %v515_v17, 4 }
  0xf7   : > { %v772_v12 = vrot.slane %v771_v56, 4  ;;  %v782_v46 = vrot.slane %v781_v19, 4  ;;  %v586_v33 = vmul.f32 %v576_v18, %v1526_v60  ;;  %v587_v61 = vmul.f32 %v576_v18, %v1528_v62 }
  0xf8   : > { %v820_v20 = vmul.f32 %v1530_v40, %v576_v18  ;;  %v821_v52 = vmul.f32 %v1532_v0, %v576_v18  ;;  %v507_v53 = vadd.f32 %v506_v45, %v505_v37  ;;  %v517_v57 = vadd.f32 %v516_v10, %v515_v17 }
  0xf9   : > { %v773_v5 = vadd.f32 %v772_v12, %v771_v56  ;;  %v783_v41 = vadd.f32 %v782_v46, %v781_v19  ;;  %v580_v63 = vpop.permute.xlu1 %579  ;;  %v591_v8 = vadd.f32 %v590_v13, %v586_v33  ;;  %v601_v49 = vadd.f32 %v600_v14, %v587_v61 }
  0xfa   : > { %v825_v21 = vadd.f32 %v824_v7, %v820_v20  ;;  %v835_v43 = vadd.f32 %v834_v11, %v821_v52  ;;  %v508_v59 = vrot.slane %v507_v53, 2  ;;  %v518_v50 = vrot.slane %v517_v57, 2 }
  0xfb   : > { %v774_v54 = vrot.slane %v773_v5, 2  ;;  %v784_v26 = vrot.slane %v783_v41, 2  ;;  %v588_v60 = vmul.f32 %v580_v63, %v1534_v9  ;;  %v589_v62 = vmul.f32 %v580_v63, %v1536_v51 }
  0xfc   : > { %v822_v40 = vmul.f32 %v1544_v6, %v580_v63  ;;  %v823_v0 = vmul.f32 %v1546_v4, %v580_v63  ;;  %v509_v22 = vadd.f32 %v508_v59, %v507_v53  ;;  %v519_v31 = vadd.f32 %v518_v50, %v517_v57  ;;  %v619_v59 = vpop.permute.xlu0 %618 }
  0xfd   : > { %v775_v2 = vadd.f32 %v774_v54, %v773_v5  ;;  %v785_v13 = vadd.f32 %v784_v26, %v783_v41  ;;  %v592_v14 = vsel %vm503_vm0, %v588_v60, 0.0  ;;  %v602_v3 = vsel %vm503_vm0, %v589_v62, 0.0 }
  0xfe   : > { %v826_v32 = vsel %vm503_vm0, %v822_v40, 0.0  ;;  %v836_v23 = vsel %vm503_vm0, %v823_v0, 0.0  ;;  %v593_v1 = vadd.f32 %v592_v14, %v591_v8  ;;  %v603_v9 = vadd.f32 %v602_v3, %v601_v49 }
  0xff   : > { %v827_v28 = vadd.f32 %v826_v32, %v825_v21  ;;  %v837_v51 = vadd.f32 %v836_v23, %v835_v43  ;;  %v510_v25 = vrot.slane %v509_v22, 1  ;;  %v520_v6 = vrot.slane %v519_v31, 1 }
 0x100   : > { %v553_v35 = vadd.f32 %v552_v58, %v551_v30  ;;  %v563_v4 = vadd.f32 %v562_v36, %v561_v55  ;;  %v594_v27 = vrot.slane %v593_v1, 4  ;;  %v604_v42 = vrot.slane %v603_v9, 4 }
 0x101   : > { %v828_v24 = vrot.slane %v827_v28, 4  ;;  %v838_v38 = vrot.slane %v837_v51, 4  ;;  %v511_v15 = vadd.f32 %v510_v25, %v509_v22  ;;  %v521_v39 = vadd.f32 %v520_v6, %v519_v31 }
 0x102   : > { %v554_v47 = vrot.slane %v553_v35, 1  ;;  %v564_v48 = vrot.slane %v563_v4, 1  ;;  %v595_v44 = vadd.f32 %v594_v27, %v593_v1  ;;  %v605_v16 = vadd.f32 %v604_v42, %v603_v9 }
 0x103   : > { %v829_v7 = vadd.f32 %v828_v24, %v827_v28  ;;  %v839_v11 = vadd.f32 %v838_v38, %v837_v51  ;;  %v802_v37 = vrot.slane %v1588_v34, 2  ;;  %v812_v17 = vrot.slane %v1590_v29, 2 }
 0x104   : > { %v555_v56 = vadd.f32 %v554_v47, %v553_v35  ;;  %v565_v19 = vadd.f32 %v564_v48, %v563_v4  ;;  %v596_v30 = vrot.slane %v595_v44, 2  ;;  %v606_v55 = vrot.slane %v605_v16, 2 }
 0x105   : > { %v830_v18 = vrot.slane %v829_v7, 2  ;;  %v840_v58 = vrot.slane %v839_v11, 2  ;;  %v776_v10 = vrot.slane %v775_v2, 1  ;;  %v786_v12 = vrot.slane %v785_v13, 1 }
 0x106   : > { %v611_v36 = vsel %vm610_vm1, %v511_v15, %v555_v56  ;;  %v612_v45 = vsel %vm610_vm1, %v521_v39, %v565_v19  ;;  %v597_v46 = vadd.f32 %v596_v30, %v595_v44  ;;  %v607_v33 = vadd.f32 %v606_v55, %v605_v16 }
 0x107   : > { %v831_v61 = vadd.f32 %v830_v18, %v829_v7  ;;  %v841_v20 = vadd.f32 %v840_v58, %v839_v11  ;;  %v803_v52 = vadd.f32 %v802_v37, %v1588_v34  ;;  %v813_v53 = vadd.f32 %v812_v17, %v1590_v29 }
 0x108   : > { %v598_v57 = vrot.slane %v597_v46, 1  ;;  %v608_v5 = vrot.slane %v607_v33, 1  ;;  %v777_v8 = vadd.f32 %v776_v10, %v775_v2  ;;  %v787_v49 = vadd.f32 %v786_v12, %v785_v13 }
 0x109   : > { %v832_v41 = vrot.slane %v831_v61, 1  ;;  %v842_v63 = vrot.slane %v841_v20, 1  ;;  %v804_v21 = vrot.slane %v803_v52, 1  ;;  %v814_v43 = vrot.slane %v813_v53, 1 }
 0x10a   : > { %v599_v50 = vadd.f32 %v598_v57, %v597_v46  ;;  %v609_v54 = vadd.f32 %v608_v5, %v607_v33 }
 0x10b   : > { %v833_v26 = vadd.f32 %v832_v41, %v831_v61  ;;  %v843_v60 = vadd.f32 %v842_v63, %v841_v20  ;;  %v805_v34 = vadd.f32 %v804_v21, %v803_v52  ;;  %v815_v62 = vadd.f32 %v814_v43, %v813_v53 }
 0x10c   : > { %v614_v29 = vsel %vm613_vm2, %v611_v36, %v599_v50  ;;  %v615_v40 = vsel %vm613_vm2, %v612_v45, %v609_v54 }
 0x10d   : > { %v621_v0 = vadd.f32 %v619_v59, %v614_v29  ;;  %v622_v22 = vadd.f32 %v619_v59, %v615_v40  ;;  %v844_v31 = vsel %vm610_vm1, %v777_v8, %v805_v34  ;;  %v845_v2 = vsel %vm610_vm1, %v787_v49, %v815_v62 }
 0x10e   : > { %v846_v13 = vsel %vm613_vm2, %v844_v31, %v833_v26  ;;  %v847_v14 = vsel %vm613_vm2, %v845_v2, %v843_v60 }
 0x10f   : > { %v623_v3 = vmax.f32 %v621_v0, 0.0  ;;  %v624_v32 = vmax.f32 %v622_v22, 0.0  ;;  %v848_v23 = vadd.f32 %v846_v13, %v619_v59  ;;  %v849_v1 = vadd.f32 %v847_v14, %v619_v59 }
 0x111   : > { %v627_v9 = vcombine.low %v623_v3, %v624_v32  ;;  %v850_v28 = vmax.f32 %v848_v23, 0.0  ;;  %v851_v51 = vmax.f32 %v849_v1, 0.0 }
 0x113   : > { %v854_v25 = vcombine.low %v850_v28, %v851_v51  ;;  %629 = vst [vmem:[%s218_s7] sm:$0x77] %v627_v9 }
 0x115   : > { %856 = vst [vmem:[%s218_s7 + $0x8] sm:$0x77] %v854_v25 }
 0x116   : > { %1024 = shalt.err (!%p1021_p3)
}
 0x117   : > { %s1025_s16 = scalar_lea.hbm %s1623_s11, 256  ;;  %s1029_s25 = scalar_lea.hbm %s1672_s5, 512 }
 0x118   : > { %p1026_p4 = scmp.ne.s32.totalorder %s1623_s11, %s1025_s16  ;;  %p1030_p9 = scmp.lt.u32.totalorder %s1623_s11, %s1672_s5 }
 0x119   : > { %p1031_p10 = scmp.lt.u32.totalorder %s1029_s25, %s1025_s16  ;;  %p1033_p12 = scmp.lt.u32.totalorder %s1025_s16, %s1623_s11 }
 0x11a   : > { %p1027_p7 = pnand %p1026_p4, %p1149_p5 }
 0x11b   : > { %p1032_p11 = por %p1031_p10, %p1030_p9 }
 0x11c   : > { %p1028_p8 = pneg %p1027_p7 }
 0x11d   : > { %p1034_p13 = por %p1033_p12, %p1032_p11 }
 0x11f   : > { %p1035_p0 = pnand %p1034_p13, %p1028_p8 }
 0x121   : > { %1038 = shalt.err (!%p1035_p0)
}
 0x122   : > { %944 = dma.vmem_to_hbm [thread:$0]  (%p1149_p5), %s1625_s8, 256, %s1623_s11, %s858_s22  }
 0x123 PF: > { %p950_p1 = scmp.ge.s32.totalorder %s1073_s21, 2  ;;  %s884_s6 = sand.u32 1, %s1061_s18  }
 0x124   : > { %s885_s7 = scalar_lea.sflag [#allocation3], %s884_s6 }
 0x125   : > { %p947_p2 = pnand %p950_p1, %p1153_p6 }
 0x127   : > { %1056 = dma.done.wait (!%p947_p2), %s885_s7, 256  }
 0x128   : > { %1058 = vsyncadd (!%p947_p2), %s885_s7, 4294967040  ;;  %p15_p3 = scmp.ge.s32.totalorder %s1136_s24, 4   ;;  %s1731_s18 = smov %s1065_s19 }
 0x129   : > { %s1732_s19 = smov %s1069_s20  ;;  %s1733_s20 = smov %s1147_s27 }
 0x12a   : > { %s1734_s21 = smov %s1136_s24  ;;  %17 = sbr.rel (!%p15_p3) target bundleno = 3 (0x3), region = 75 }
 0x131   :  { %890 = vsyncpa [#allocation3], 1 }
 0x132   :  { %892 = vsyncpa [#allocation3 + $0x1], 1 }

</bundles_post_ra>
